<compile_context>
chip_gen: v5e
topology: v5e:2x2
jax: 0.10.0
libtpu: 0.0.40
codegen_flags: <defaults>
</compile_context>

<pallas_src>
import functools
import math

import jax
import jax.numpy as jnp
from jax.experimental import pallas as pl
from jax.experimental.pallas import tpu as pltpu

BN_EPS = 1e-5
MXU_DTYPE = jnp.bfloat16          # matmul operand dtype (f32 accumulation)
TILE_CAP = 1024                   # max rows per M tile
VMEM_LIMIT = 32 * 1024 * 1024


def _pick_tile(M, cap=TILE_CAP):
    """Largest multiple-of-8 divisor of M that is <= cap (else M itself)."""
    if M <= cap:
        return M
    for t in range(cap, 7, -8):
        if M % t == 0:
            return t
    return M


# ----------------------------- BN statistics ---------------------------------

def _bn_stats_kernel(x_ref, o_ref, sum_ref, sq_ref, *, inv_m):
    # Tiled global reduction: per-channel mean and rsqrt(var+eps) for
    # training-mode BatchNorm3d (gamma=1, beta=0).  Accumulators stay resident
    # in VMEM across the M grid (init / finalize via pl.when).
    @pl.when(pl.program_id(0) == 0)
    def _():
        sum_ref[...] = jnp.zeros_like(sum_ref)
        sq_ref[...] = jnp.zeros_like(sq_ref)

    x = x_ref[...]
    sum_ref[...] += jnp.sum(x, axis=0, keepdims=True)
    sq_ref[...] += jnp.sum(x * x, axis=0, keepdims=True)

    @pl.when(pl.program_id(0) == pl.num_programs(0) - 1)
    def _():
        mean = sum_ref[...] * inv_m
        var = jnp.maximum(sq_ref[...] * inv_m - mean * mean, 0.0)
        o_ref[0:1, :] = mean
        o_ref[1:2, :] = jax.lax.rsqrt(var + BN_EPS)


@functools.lru_cache(maxsize=None)
def _bn_stats_call(M, C, tm):
    kernel = functools.partial(_bn_stats_kernel, inv_m=1.0 / M)
    return jax.jit(pl.pallas_call(
        kernel,
        out_shape=jax.ShapeDtypeStruct((2, C), jnp.float32),
        grid=(M // tm,),
        in_specs=[pl.BlockSpec((tm, C), lambda i: (i, 0))],
        out_specs=pl.BlockSpec((2, C), lambda i: (0, 0)),
        scratch_shapes=[pltpu.VMEM((1, C), jnp.float32),
                        pltpu.VMEM((1, C), jnp.float32)],
        compiler_params=pltpu.CompilerParams(
            dimension_semantics=("arbitrary",),
            vmem_limit_bytes=VMEM_LIMIT),
    ))


def bn_stats(x):
    # x: (N, D, H, W, C) f32  ->  (mean (C,), rsqrt(var+eps) (C,))
    N, D, H, W, C = x.shape
    M = N * D * H * W
    st = _bn_stats_call(M, C, _pick_tile(M))(x.reshape(M, C))
    return st[0], st[1]


# --------------------- fused (BN+ReLU+)Conv as matmul ------------------------

def _conv_kernel_bn(p_ref, w_ref, mean_ref, inv_ref, o_ref):
    # Fused BN(train) + ReLU + conv-as-matmul on one (tm, K*Cin) patch tile.
    p = p_ref[...].astype(jnp.float32)
    p = jnp.maximum((p - mean_ref[...]) * inv_ref[...], 0.0)
    o_ref[...] = jnp.dot(p.astype(w_ref.dtype), w_ref[...],
                         preferred_element_type=jnp.float32)


def _conv_kernel_plain(p_ref, w_ref, o_ref):
    o_ref[...] = jnp.dot(p_ref[...], w_ref[...],
                         preferred_element_type=jnp.float32)


@functools.lru_cache(maxsize=None)
def _conv_call(M, KC, Cout, tm, fuse_bn):
    in_specs = [pl.BlockSpec((tm, KC), lambda i: (i, 0)),
                pl.BlockSpec((KC, Cout), lambda i: (0, 0))]
    if fuse_bn:
        in_specs += [pl.BlockSpec((1, KC), lambda i: (0, 0)),
                     pl.BlockSpec((1, KC), lambda i: (0, 0))]
    return jax.jit(pl.pallas_call(
        _conv_kernel_bn if fuse_bn else _conv_kernel_plain,
        out_shape=jax.ShapeDtypeStruct((M, Cout), jnp.float32),
        grid=(M // tm,),
        in_specs=in_specs,
        out_specs=pl.BlockSpec((tm, Cout), lambda i: (i, 0)),
        compiler_params=pltpu.CompilerParams(
            dimension_semantics=("parallel",),
            vmem_limit_bytes=VMEM_LIMIT),
    ))


def _t3(v):
    return (v, v, v) if isinstance(v, int) else tuple(v)


def _dense_weight(w, groups):
    # torch weight (Cout, Cin//g, kd, kh, kw) -> dense block-diagonal
    # (K*Cin, Cout) with taps folded into the contraction (tap-major order).
    # NOTE: for grouped convs the off-diagonal zeros waste some MXU work; with
    # Cin <= 48 here this is cheaper than per-group matmuls with tiny outputs.
    Cout, Cin_g, kd, kh, kw = w.shape
    K = kd * kh * kw
    cout_g = Cout // groups
    Cin = Cin_g * groups
    wr = w.reshape(groups, cout_g, Cin_g, K)
    wr = jnp.transpose(wr, (3, 0, 2, 1))            # (K, g, Cin_g, cout_g)
    dense = jnp.zeros((K, Cin, Cout), jnp.float32)
    for gi in range(groups):
        dense = dense.at[:, gi * Cin_g:(gi + 1) * Cin_g,
                         gi * cout_g:(gi + 1) * cout_g].set(wr[:, gi])
    return dense.reshape(K * Cin, Cout)


def conv3d(x, w, *, stats=None, stride=1, padding=0, dilation=1, groups=1):
    """Conv3d, optionally fused with a preceding training-mode BN + ReLU.

    x: (N, D, H, W, Cin) f32; w: torch layout (Cout, Cin//groups, kd, kh, kw).
    stats: None for a plain conv, else (mean(C,), rsqrt(var+eps)(C,)) of x.
    """
    N, D, H, W, Cin = x.shape
    Cout, _, kd, kh, kw = w.shape
    sd, sh, sw = _t3(stride)
    pd, ph, pw = _t3(padding)
    dd, dh, dw = _t3(dilation)
    Do = (D + 2 * pd - dd * (kd - 1) - 1) // sd + 1
    Ho = (H + 2 * ph - dh * (kh - 1) - 1) // sh + 1
    Wo = (W + 2 * pw - dw * (kw - 1) - 1) // sw + 1
    K = kd * kh * kw
    M = N * Do * Ho * Wo

    if pd or ph or pw:
        if stats is not None:
            # Pad the raw input with the per-channel mean so padded entries
            # normalize to 0 (== torch's zero-padding of the BN+ReLU output).
            fill = jnp.broadcast_to(
                stats[0].reshape(1, 1, 1, 1, Cin),
                (N, D + 2 * pd, H + 2 * ph, W + 2 * pw, Cin))
            xp = jax.lax.dynamic_update_slice(fill, x, (0, pd, ph, pw, 0))
        else:
            xp = jnp.pad(x, ((0, 0), (pd, pd), (ph, ph), (pw, pw), (0, 0)))
    else:
        xp = x

    if K == 1 and (sd, sh, sw) == (1, 1, 1):
        patches = xp.reshape(M, Cin).astype(MXU_DTYPE)      # no im2col copy
    else:
        # TODO(synk): for stride-1 convs, read the K shifted windows inside the
        # kernel (halo DMA) instead of materializing the im2col patches in HBM.
        taps = []
        for a in range(kd):
            for b in range(kh):
                for c in range(kw):
                    sl = jax.lax.slice(
                        xp,
                        (0, a * dd, b * dh, c * dw, 0),
                        (N, a * dd + (Do - 1) * sd + 1,
                         b * dh + (Ho - 1) * sh + 1,
                         c * dw + (Wo - 1) * sw + 1, Cin),
                        (1, sd, sh, sw, 1))
                    taps.append(sl.reshape(M, Cin).astype(MXU_DTYPE))
        patches = jnp.concatenate(taps, axis=-1)            # (M, K*Cin) bf16

    wd = _dense_weight(w, groups).astype(MXU_DTYPE)         # (K*Cin, Cout)
    tm = _pick_tile(M)
    if stats is None:
        out = _conv_call(M, K * Cin, Cout, tm, False)(patches, wd)
    else:
        mean_k = jnp.tile(stats[0], K).reshape(1, K * Cin)
        inv_k = jnp.tile(stats[1], K).reshape(1, K * Cin)
        out = _conv_call(M, K * Cin, Cout, tm, True)(patches, wd, mean_k, inv_k)
    return out.reshape(N, Do, Ho, Wo, Cout)


# ------------------------------ softmax --------------------------------------

def _softmax_kernel(x_ref, o_ref):
    x = x_ref[...]
    e = jnp.exp(x - jnp.max(x, axis=-1, keepdims=True))
    o_ref[...] = e / jnp.sum(e, axis=-1, keepdims=True)


@functools.lru_cache(maxsize=None)
def _softmax_call(M, C, tm):
    return jax.jit(pl.pallas_call(
        _softmax_kernel,
        out_shape=jax.ShapeDtypeStruct((M, C), jnp.float32),
        grid=(M // tm,),
        in_specs=[pl.BlockSpec((tm, C), lambda i: (i, 0))],
        out_specs=pl.BlockSpec((tm, C), lambda i: (i, 0)),
        compiler_params=pltpu.CompilerParams(
            dimension_semantics=("parallel",),
            vmem_limit_bytes=VMEM_LIMIT),
    ))


# ------------------- fused trilinear x2 upsample kernel ----------------------

def _upsample2x_kernel(p_ref, c_ref, n_ref, o_ref):
    # Trilinear x2, align_corners=False: for input depth slab d the two output
    # depth slabs 2d / 2d+1 are lerps of (d-1, d) and (d, d+1) (clamped via the
    # index_map); H and W are interpolated in-register.  The output packs the
    # W-interleave into the last dim (2*C) so the wrapper reshape is a pure
    # row-major reshape (no transpose).
    prev, cur, nxt = p_ref[0, 0], c_ref[0, 0], n_ref[0, 0]
    for di, s in enumerate((0.25 * prev + 0.75 * cur, 0.75 * cur + 0.25 * nxt)):
        sp = jnp.concatenate([s[:1], s[:-1]], axis=0)       # shift (+clamp) in H
        sn = jnp.concatenate([s[1:], s[-1:]], axis=0)
        for hi, t in enumerate((0.25 * sp + 0.75 * s, 0.75 * s + 0.25 * sn)):
            tp = jnp.concatenate([t[:, :1], t[:, :-1]], axis=1)   # shift in W
            tn = jnp.concatenate([t[:, 1:], t[:, -1:]], axis=1)
            o_ref[0, di, :, hi, :, :] = jnp.concatenate(
                [0.25 * tp + 0.75 * t, 0.75 * t + 0.25 * tn], axis=-1)


@functools.lru_cache(maxsize=None)
def _upsample_call(N, D, H, W, C):
    spec = lambda im: pl.BlockSpec((1, 1, H, W, C), im)
    return jax.jit(pl.pallas_call(
        _upsample2x_kernel,
        out_shape=jax.ShapeDtypeStruct((N * D, 2, H, 2, W, 2 * C), jnp.float32),
        grid=(N, D),
        in_specs=[spec(lambda n, d: (n, jnp.maximum(d - 1, 0), 0, 0, 0)),
                  spec(lambda n, d: (n, d, 0, 0, 0)),
                  spec(lambda n, d: (n, jnp.minimum(d + 1, D - 1), 0, 0, 0))],
        out_specs=pl.BlockSpec((1, 2, H, 2, W, 2 * C),
                               lambda n, d: (n * D + d, 0, 0, 0, 0, 0)),
        compiler_params=pltpu.CompilerParams(
            dimension_semantics=("parallel", "parallel"),
            vmem_limit_bytes=VMEM_LIMIT),
    ))


def upsample_trilinear_2x(x):
    # x: (N, D, H, W, C) -> (N, 2D, 2H, 2W, C), matching
    # nn.Upsample(scale_factor=2, mode='trilinear', align_corners=False).
    N, D, H, W, C = x.shape
    out = _upsample_call(N, D, H, W, C)(x, x, x)
    return out.reshape(N, 2 * D, 2 * H, 2 * W, C)


# ------------------------------ parameters -----------------------------------

class _KeyGen:
    def __init__(self, seed=0):
        self.key = jax.random.PRNGKey(seed)

    def __call__(self):
        self.key, sub = jax.random.split(self.key)
        return sub


def _conv_w(kg, cout, cin_g, k):
    # kaiming_normal_ (fan_in, gain=sqrt(2)); all convs are bias-free.
    fan_in = cin_g * k[0] * k[1] * k[2]
    std = math.sqrt(2.0 / fan_in)
    return std * jax.random.normal(kg(), (cout, cin_g) + tuple(k), jnp.float32)


def _make_mf(kg, num_in, num_out, g, stride):
    num_mid = num_in if num_in <= num_out else num_out
    p = {'g': g, 'stride': stride,
         'in1': _conv_w(kg, num_in // 4, num_in, (1, 1, 1)),
         'in2': _conv_w(kg, num_mid, num_in // 4, (1, 1, 1)),
         'm1': _conv_w(kg, num_out, num_mid // g, (3, 3, 3)),
         'm2': _conv_w(kg, num_out, num_out // g, (3, 3, 1))}
    if num_in != num_out or stride != 1:
        if stride == 1:
            p['sc'] = _conv_w(kg, num_out, num_in, (1, 1, 1)); p['sc_k'] = 1
        else:
            p['sc'] = _conv_w(kg, num_out, num_in, (2, 2, 2)); p['sc_k'] = 2
    return p


def _make_dmf(kg, num_in, num_out, g, stride, dilation=(1, 2, 3)):
    num_mid = num_in if num_in <= num_out else num_out
    p = {'g': g, 'stride': stride, 'dilation': tuple(dilation),
         'w': (1.0, 1.0, 1.0),   # nn.Parameter(torch.ones(1)) x3
         'in1': _conv_w(kg, num_in // 4, num_in, (1, 1, 1)),
         'in2': _conv_w(kg, num_mid, num_in // 4, (1, 1, 1)),
         'm1': [_conv_w(kg, num_out, num_mid // g, (3, 3, 3)) for _ in range(3)],
         'm2': _conv_w(kg, num_out, num_out // g, (3, 3, 1))}
    if num_in != num_out or stride != 1:
        if stride == 1:
            p['sc'] = _conv_w(kg, num_out, num_in, (1, 1, 1)); p['sc_k'] = 1
        else:
            p['sc'] = _conv_w(kg, num_out, num_in, (2, 2, 2)); p['sc_k'] = 2
    return p


def build_params(c=4, n=8, channels=16, groups=4, num_classes=4, seed=0):
    kg = _KeyGen(seed)
    P = {}
    P['enc1'] = _conv_w(kg, n, c, (3, 3, 3))
    P['enc2'] = [_make_dmf(kg, n, channels, groups, 2),
                 _make_dmf(kg, channels, channels, groups, 1),
                 _make_dmf(kg, channels, channels, groups, 1)]
    P['enc3'] = [_make_dmf(kg, channels, 2 * channels, groups, 2),
                 _make_dmf(kg, 2 * channels, 2 * channels, groups, 1),
                 _make_dmf(kg, 2 * channels, 2 * channels, groups, 1)]
    P['enc4'] = [_make_mf(kg, 2 * channels, 3 * channels, groups, 2),
                 _make_mf(kg, 3 * channels, 3 * channels, groups, 1),
                 _make_mf(kg, 3 * channels, 2 * channels, groups, 1)]
    P['res1'] = _make_dmf(kg, n, n, groups, 1)
    P['res2'] = _make_dmf(kg, channels, channels, 1, 1)          # g defaults to 1
    P['res3'] = _make_dmf(kg, 2 * channels, 2 * channels, 1, 1)  # g defaults to 1
    P['dec1'] = _make_mf(kg, 4 * channels, 2 * channels, groups, 1)
    P['dec2'] = _make_mf(kg, 3 * channels, channels, groups, 1)
    P['dec3'] = _make_mf(kg, channels + n, n, groups, 1)
    P['seg'] = _conv_w(kg, num_classes, n, (1, 1, 1))
    return P


# ---------------------------- module forward ---------------------------------

def _conv_block(x, w, stats, *, stride=1, padding=0, dilation=1, groups=1):
    # Conv3d_Block / DilatedConv3DBlock: BN(train) -> ReLU -> Conv, fused.
    return conv3d(x, w, stats=stats, stride=stride, padding=padding,
                  dilation=dilation, groups=groups)


def _shortcut(x, p, st_x):
    if 'sc' not in p:
        return x
    if p['sc_k'] == 1:
        return _conv_block(x, p['sc'], st_x)
    return _conv_block(x, p['sc'], st_x, stride=2)


def mfunit(x, p):
    g, s = p['g'], p['stride']
    st_x = bn_stats(x)                      # shared by in1 and the shortcut BN
    x1 = _conv_block(x, p['in1'], st_x)
    x2 = _conv_block(x1, p['in2'], bn_stats(x1))
    x3 = _conv_block(x2, p['m1'], bn_stats(x2), stride=s, padding=1, groups=g)
    x4 = _conv_block(x3, p['m2'], bn_stats(x3), padding=(1, 1, 0), groups=g)
    return x4 + _shortcut(x, p, st_x)


def dmfunit(x, p):
    g, s = p['g'], p['stride']
    st_x = bn_stats(x)
    x1 = _conv_block(x, p['in1'], st_x)
    x2 = _conv_block(x1, p['in2'], bn_stats(x1))
    st_x2 = bn_stats(x2)                    # shared by the 3 dilated branches
    x3 = None
    for i, d in enumerate(p['dilation']):
        b = p['w'][i] * _conv_block(x2, p['m1'][i], st_x2, stride=s,
                                    padding=(d, d, d), dilation=(d, d, d),
                                    groups=g)
        x3 = b if x3 is None else x3 + b
    x4 = _conv_block(x3, p['m2'], bn_stats(x3), padding=(1, 1, 0), groups=g)
    return x4 + _shortcut(x, p, st_x)


def forward(params, x_ncdhw):
    x = jnp.transpose(x_ncdhw, (0, 2, 3, 4, 1)).astype(jnp.float32)  # -> NDHWC
    x1 = conv3d(x, params['enc1'], stride=2, padding=1)
    x1_res = dmfunit(x1, params['res1'])
    x2 = x1
    for p in params['enc2']:
        x2 = dmfunit(x2, p)
    x2_res = dmfunit(x2, params['res2'])
    x3 = x2
    for p in params['enc3']:
        x3 = dmfunit(x3, p)
    x3_res = dmfunit(x3, params['res3'])
    x4 = x3
    for p in params['enc4']:
        x4 = mfunit(x4, p)

    y1 = upsample_trilinear_2x(x4)
    y1 = jnp.concatenate([x3_res, y1], axis=-1)
    y1 = mfunit(y1, params['dec1'])

    y2 = upsample_trilinear_2x(y1)
    y2 = jnp.concatenate([x2_res, y2], axis=-1)
    y2 = mfunit(y2, params['dec2'])

    y3 = upsample_trilinear_2x(y2)
    y3 = jnp.concatenate([x1_res, y3], axis=-1)
    y3 = mfunit(y3, params['dec3'])

    y4 = upsample_trilinear_2x(y3)
    y4 = conv3d(y4, params['seg'])

    N, D, H, W, C = y4.shape
    M = N * D * H * W
    y4 = _softmax_call(M, C, _pick_tile(M))(y4.reshape(M, C))
    y4 = y4.reshape(N, D, H, W, C)
    return jnp.transpose(y4, (0, 4, 1, 2, 3))  # back to NCDHW


# --------------------------------- main ---------------------------------------

if __name__ == "__main__":
    # Small config consistent with the module (c=4, scaled-down n/channels/groups).
    params = build_params(c=4, n=8, channels=16, groups=4, num_classes=4, seed=0)
    x = jax.random.normal(jax.random.PRNGKey(0), (1, 4, 16, 16, 16), jnp.float32)
    fwd = jax.jit(functools.partial(forward, params))
    y = jax.block_until_ready(fwd(x))
    assert y.shape == (1, 4, 16, 16, 16), y.shape
    assert bool(jnp.isfinite(y).all())
    print("KERNEL_OK")
</pallas_src>

<mosaic_0001>
module attributes {stable_mosaic.version = 11 : i64} {
  func.func @_conv_kernel_plain(%arg0: i32, %arg1: memref<512x108xbf16, #tpu.memory_space<vmem>>, %arg2: memref<108x8xbf16, #tpu.memory_space<vmem>>, %arg3: memref<512x8xf32, #tpu.memory_space<vmem>>) attributes {dimension_semantics = [#tpu.dimension_semantics<parallel>], iteration_bounds = array<i64: 1>, scalar_prefetch = 0 : i64, scratch_operands = 0 : i64, tpu.core_type = #tpu.core_type<tc>, window_params = [{transform_indices = @transform_0, window_bounds = array<i64: 512, 108>}, {pipeline_mode = #tpu.pipeline_mode<synchronous>, transform_indices = @transform_1, window_bounds = array<i64: 108, 8>}, {transform_indices = @transform_2, window_bounds = array<i64: 512, 8>}]} {
    %c0 = arith.constant 0 : index
    %c0_0 = arith.constant 0 : index
    %0 = vector.load %arg1[%c0, %c0_0] : memref<512x108xbf16, #tpu.memory_space<vmem>>, vector<512x108xbf16>
    %c0_1 = arith.constant 0 : index
    %c0_2 = arith.constant 0 : index
    %1 = vector.load %arg2[%c0_1, %c0_2] : memref<108x8xbf16, #tpu.memory_space<vmem>>, vector<108x8xbf16>
    %cst = arith.constant dense<0.000000e+00> : vector<512x8xf32>
    %2 = tpu.matmul %0, %1, %cst {dimension_numbers = #tpu.dot_dimension_numbers<[1], [0], [0], [1], [0, 0, 1, 1], [], []>} : vector<512x108xbf16>, vector<108x8xbf16>, vector<512x8xf32> -> vector<512x8xf32>
    %c0_3 = arith.constant 0 : index
    %c0_4 = arith.constant 0 : index
    %3 = vector.load %arg3[%c0_3, %c0_4] : memref<512x8xf32, #tpu.memory_space<vmem>>, vector<512x8xf32>
    tpu.vector_store %arg3[%c0_3, %c0_4], %2 {strides = array<i32>} : memref<512x8xf32, #tpu.memory_space<vmem>>, vector<512x8xf32>,
    return
  }
  func.func @transform_0(%arg0: i32) -> (i32, i32) {
    %c0_i32 = arith.constant 0 : i32
    %c0_i32_0 = arith.constant 0 : i32
    return %arg0, %c0_i32 : i32, i32
  }
  func.func @transform_1(%arg0: i32) -> (i32, i32) {
    %c0_i32 = arith.constant 0 : i32
    %c0_i32_0 = arith.constant 0 : i32
    %c0_i32_1 = arith.constant 0 : i32
    return %c0_i32, %c0_i32_0 : i32, i32
  }
  func.func @transform_2(%arg0: i32) -> (i32, i32) {
    %c0_i32 = arith.constant 0 : i32
    %c0_i32_0 = arith.constant 0 : i32
    return %arg0, %c0_i32 : i32, i32
  }
}

</mosaic_0001>

<bundles_post_ra>
// kernel: tpu_custom_call.1
= control target key start
LH: loop header
LB: loop body
LE: loop exit
PB: predicated region body
PF: predicated region fallthrough
CT: control target
= control target key end

     0   :  { %vm388_vm0 = vcmask 1045504   ;;  %vm291_vm1 = vcmask 883712   ;;  %vm561_vm2 = vcmask 64512   ;;  %s1301_s1 = inlined_call_operand.vmem [shape: bf16[108,8], index: 1, kind: input, shape index: {}]   ;;  %s1302_s0 = inlined_call_operand.vmem [shape: bf16[512,108], index: 0, kind: input, shape index: {}]   ;;  %s1303_s2 = inlined_call_operand.vmem [shape: f32[512,8], index: 2, kind: output, shape index: {}]  }
   0x1   :  { %v784_v0 = vld [vmem:[%s1301_s1 + $0x30] sm:$0xf]  ;;  %v856_v1 = vld [vmem:[%s1301_s1 + $0x30] sm:$0x30]  ;;  %v855_v4 = vld [vmem:[%s1301_s1 + $0x28] sm:$0xff] }
   0x2   :  { %v785_v2 = vor.u32 %v856_v1, %v784_v0  ;;  %v854_v5 = vld [vmem:[%s1301_s1 + $0x20] sm:$0xff]  ;;  %v853_v6 = vld [vmem:[%s1301_s1 + $0x18] sm:$0xff]  ;;  %v852_v7 = vld [vmem:[%s1301_s1 + $0x10] sm:$0xff] }
   0x3   :  { %v851_v8 = vld [vmem:[%s1301_s1 + $0x8] sm:$0xff]  ;;  %v850_v9 = vld [vmem:[%s1301_s1] sm:$0xff]  ;;  %v820_v18 = vld [vmem:[%s1302_s0 + $0x10] sm:$0xff] }
   0x4   :  { %v390_v3 = vsel %vm388_vm0, %v785_v2, 0  ;;  %v818_v10 = vld [vmem:[%s1302_s0] sm:$0xff]  ;;  %v819_v14 = vld [vmem:[%s1302_s0 + $0x8] sm:$0xff]  ;;  %v828_v19 = vld [vmem:[%s1302_s0 + $0x50] sm:$0xff] }
   0x5   :  { %393 = vmatpush.bf16.msra.mxu0 %v390_v3  ;;  %857 = vmatpush.bf16.msra.mxu1 %v390_v3  ;;  %v826_v11 = vld [vmem:[%s1302_s0 + $0x40] sm:$0xff]  ;;  %v827_v15 = vld [vmem:[%s1302_s0 + $0x48] sm:$0xff]  ;;  %v836_v20 = vld [vmem:[%s1302_s0 + $0x90] sm:$0xff] }
   0x6   :  { %858 = vmatpush.bf16.msra.mxu2 %v390_v3  ;;  %859 = vmatpush.bf16.msra.mxu3 %v390_v3  ;;  %v834_v12 = vld [vmem:[%s1302_s0 + $0x80] sm:$0xff]  ;;  %v835_v16 = vld [vmem:[%s1302_s0 + $0x88] sm:$0xff]  ;;  %v844_v21 = vld [vmem:[%s1302_s0 + $0xd0] sm:$0xff] }
   0x7   :  { %v842_v13 = vld [vmem:[%s1302_s0 + $0xc0] sm:$0xff]  ;;  %v843_v17 = vld [vmem:[%s1302_s0 + $0xc8] sm:$0xff]  ;;  %v821_v22 = vld [vmem:[%s1302_s0 + $0x18] sm:$0xff] }
   0x8   :  { %v829_v23 = vld [vmem:[%s1302_s0 + $0x58] sm:$0xff]  ;;  %v822_v26 = vld [vmem:[%s1302_s0 + $0x20] sm:$0xff]  ;;  %v823_v30 = vld [vmem:[%s1302_s0 + $0x28] sm:$0xff] }
   0x9   :  { %394 = vmatpush.bf16.msra.mxu0 %v855_v4  ;;  %860 = vmatpush.bf16.msra.mxu1 %v855_v4  ;;  %v837_v24 = vld [vmem:[%s1302_s0 + $0x98] sm:$0xff]  ;;  %v830_v27 = vld [vmem:[%s1302_s0 + $0x60] sm:$0xff]  ;;  %v831_v31 = vld [vmem:[%s1302_s0 + $0x68] sm:$0xff] }
   0xa   :  { %861 = vmatpush.bf16.msra.mxu2 %v855_v4  ;;  %862 = vmatpush.bf16.msra.mxu3 %v855_v4  ;;  %v845_v25 = vld [vmem:[%s1302_s0 + $0xd8] sm:$0xff]  ;;  %v838_v28 = vld [vmem:[%s1302_s0 + $0xa0] sm:$0xff]  ;;  %v839_v32 = vld [vmem:[%s1302_s0 + $0xa8] sm:$0xff] }
   0xb   :  { %v846_v29 = vld [vmem:[%s1302_s0 + $0xe0] sm:$0xff]  ;;  %v847_v33 = vld [vmem:[%s1302_s0 + $0xe8] sm:$0xff]  ;;  %v824_v34 = vld [vmem:[%s1302_s0 + $0x30] sm:$0xff] }
   0xc   :  { %v832_v35 = vld [vmem:[%s1302_s0 + $0x70] sm:$0xff]  ;;  %v825_v38 = vld [vmem:[%s1302_s0 + $0x38] sm:$0xff] }
   0xd   :  { %395 = vmatpush.bf16.msra.mxu0 %v854_v5  ;;  %863 = vmatpush.bf16.msra.mxu1 %v854_v5  ;;  %v840_v36 = vld [vmem:[%s1302_s0 + $0xb0] sm:$0xff]  ;;  %v833_v39 = vld [vmem:[%s1302_s0 + $0x78] sm:$0xff] }
   0xe   :  { %864 = vmatpush.bf16.msra.mxu2 %v854_v5  ;;  %865 = vmatpush.bf16.msra.mxu3 %v854_v5  ;;  %v848_v37 = vld [vmem:[%s1302_s0 + $0xf0] sm:$0xff]  ;;  %v841_v40 = vld [vmem:[%s1302_s0 + $0xb8] sm:$0xff] }
   0xf   :  { %v849_v41 = vld [vmem:[%s1302_s0 + $0xf8] sm:$0xff] }
  0x11   :  { %396 = vmatpush.bf16.msra.mxu0 %v853_v6  ;;  %866 = vmatpush.bf16.msra.mxu1 %v853_v6 }
  0x12   :  { %867 = vmatpush.bf16.msra.mxu2 %v853_v6  ;;  %868 = vmatpush.bf16.msra.mxu3 %v853_v6 }
  0x15   :  { %397 = vmatpush.bf16.msra.mxu0 %v852_v7  ;;  %869 = vmatpush.bf16.msra.mxu1 %v852_v7 }
  0x16   :  { %870 = vmatpush.bf16.msra.mxu2 %v852_v7  ;;  %871 = vmatpush.bf16.msra.mxu3 %v852_v7 }
  0x19   :  { %398 = vmatpush.bf16.msra.mxu0 %v851_v8  ;;  %872 = vmatpush.bf16.msra.mxu1 %v851_v8 }
  0x1a   :  { %873 = vmatpush.bf16.msra.mxu2 %v851_v8  ;;  %874 = vmatpush.bf16.msra.mxu3 %v851_v8 }
  0x1d   :  { %399 = vmatpush.bf16.msra.mxu0 %v850_v9  ;;  %875 = vmatpush.bf16.msra.mxu1 %v850_v9 }
  0x1e   :  { %876 = vmatpush.bf16.msra.mxu2 %v850_v9  ;;  %877 = vmatpush.bf16.msra.mxu3 %v850_v9 }
  0x20   :  { %786 = vmatmul.msk.bf16.vlgmr.msra.gmra.mxu0 %vm291_vm1, %v818_v10  ;;  %794 = vmatmul.msk.bf16.vlgmr.msra.gmra.mxu1 %vm291_vm1, %v826_v11 }
  0x21   :  { %802 = vmatmul.msk.bf16.vlgmr.msra.gmra.mxu2 %vm291_vm1, %v834_v12  ;;  %810 = vmatmul.msk.bf16.vlgmr.msra.gmra.mxu3 %vm291_vm1, %v842_v13 }
  0x30   :  { %787 = vmatmul.msk.bf16.gmra.mxu0 %vm291_vm1, %v819_v14  ;;  %795 = vmatmul.msk.bf16.gmra.mxu1 %vm291_vm1, %v827_v15 }
  0x31   :  { %803 = vmatmul.msk.bf16.gmra.mxu2 %vm291_vm1, %v835_v16  ;;  %811 = vmatmul.msk.bf16.gmra.mxu3 %vm291_vm1, %v843_v17 }
  0x40   :  { %788 = vmatmul.msk.bf16.gmra.mxu0 %vm291_vm1, %v820_v18  ;;  %796 = vmatmul.msk.bf16.gmra.mxu1 %vm291_vm1, %v828_v19 }
  0x41   :  { %804 = vmatmul.msk.bf16.gmra.mxu2 %vm291_vm1, %v836_v20  ;;  %812 = vmatmul.msk.bf16.gmra.mxu3 %vm291_vm1, %v844_v21 }
  0x50   :  { %789 = vmatmul.msk.bf16.gmra.mxu0 %vm291_vm1, %v821_v22  ;;  %797 = vmatmul.msk.bf16.gmra.mxu1 %vm291_vm1, %v829_v23 }
  0x51   :  { %805 = vmatmul.msk.bf16.gmra.mxu2 %vm291_vm1, %v837_v24  ;;  %813 = vmatmul.msk.bf16.gmra.mxu3 %vm291_vm1, %v845_v25 }
  0x60   :  { %790 = vmatmul.msk.bf16.gmra.mxu0 %vm291_vm1, %v822_v26  ;;  %798 = vmatmul.msk.bf16.gmra.mxu1 %vm291_vm1, %v830_v27 }
  0x61   :  { %806 = vmatmul.msk.bf16.gmra.mxu2 %vm291_vm1, %v838_v28  ;;  %814 = vmatmul.msk.bf16.gmra.mxu3 %vm291_vm1, %v846_v29 }
  0x70   :  { %791 = vmatmul.msk.bf16.gmra.mxu0 %vm291_vm1, %v823_v30  ;;  %799 = vmatmul.msk.bf16.gmra.mxu1 %vm291_vm1, %v831_v31 }
  0x71   :  { %807 = vmatmul.msk.bf16.gmra.mxu2 %vm291_vm1, %v839_v32  ;;  %815 = vmatmul.msk.bf16.gmra.mxu3 %vm291_vm1, %v847_v33 }
  0x80   :  { %792 = vmatmul.msk.bf16.gmra.mxu0 %vm291_vm1, %v824_v34  ;;  %800 = vmatmul.msk.bf16.gmra.mxu1 %vm291_vm1, %v832_v35 }
  0x81   :  { %808 = vmatmul.msk.bf16.gmra.mxu2 %vm291_vm1, %v840_v36  ;;  %816 = vmatmul.msk.bf16.gmra.mxu3 %vm291_vm1, %v848_v37 }
  0x90   :  { %793 = vmatmul.msk.bf16.gmra.mxu0 %vm291_vm1, %v825_v38  ;;  %801 = vmatmul.msk.bf16.gmra.mxu1 %vm291_vm1, %v833_v39 }
  0x91   :  { %809 = vmatmul.msk.bf16.gmra.mxu2 %vm291_vm1, %v841_v40  ;;  %817 = vmatmul.msk.bf16.gmra.mxu3 %vm291_vm1, %v849_v41 }
  0x9d   :  { %v401_v42 = vpop.f32.mrf.mxu0  ;;  %v441_v43 = vpop.f32.mrf.mxu1 }
  0x9e   :  { %562 = vst.msk [vmem:[%s1303_s2] sm:$0xff] %vm561_vm2, %v401_v42 }
  0x9f   :  { %578 = vst.msk [vmem:[%s1303_s2 + $0x80] sm:$0xff] %vm561_vm2, %v441_v43 }
  0xa4   :  { %v481_v44 = vpop.f32.mrf.mxu2  ;;  %v521_v45 = vpop.f32.mrf.mxu3 }
  0xa5   :  { %594 = vst.msk [vmem:[%s1303_s2 + $0x100] sm:$0xff] %vm561_vm2, %v481_v44  ;;  %v403_v46 = vpop.f32.mrf.mxu0  ;;  %v443_v47 = vpop.f32.mrf.mxu1 }
  0xa6   :  { %610 = vst.msk [vmem:[%s1303_s2 + $0x180] sm:$0xff] %vm561_vm2, %v521_v45 }
  0xa7   :  { %563 = vst.msk [vmem:[%s1303_s2 + $0x8] sm:$0xff] %vm561_vm2, %v403_v46 }
  0xa8   :  { %579 = vst.msk [vmem:[%s1303_s2 + $0x88] sm:$0xff] %vm561_vm2, %v443_v47 }
  0xac   :  { %v483_v48 = vpop.f32.mrf.mxu2  ;;  %v523_v49 = vpop.f32.mrf.mxu3 }
  0xad   :  { %595 = vst.msk [vmem:[%s1303_s2 + $0x108] sm:$0xff] %vm561_vm2, %v483_v48  ;;  %v406_v50 = vpop.f32.mrf.mxu0  ;;  %v446_v51 = vpop.f32.mrf.mxu1 }
  0xae   :  { %611 = vst.msk [vmem:[%s1303_s2 + $0x188] sm:$0xff] %vm561_vm2, %v523_v49 }
  0xaf   :  { %564 = vst.msk [vmem:[%s1303_s2 + $0x10] sm:$0xff] %vm561_vm2, %v406_v50 }
  0xb0   :  { %580 = vst.msk [vmem:[%s1303_s2 + $0x90] sm:$0xff] %vm561_vm2, %v446_v51 }
  0xb4   :  { %v486_v52 = vpop.f32.mrf.mxu2  ;;  %v526_v53 = vpop.f32.mrf.mxu3 }
  0xb5   :  { %596 = vst.msk [vmem:[%s1303_s2 + $0x110] sm:$0xff] %vm561_vm2, %v486_v52  ;;  %v408_v54 = vpop.f32.mrf.mxu0  ;;  %v448_v55 = vpop.f32.mrf.mxu1 }
  0xb6   :  { %612 = vst.msk [vmem:[%s1303_s2 + $0x190] sm:$0xff] %vm561_vm2, %v526_v53 }
  0xb7   :  { %565 = vst.msk [vmem:[%s1303_s2 + $0x18] sm:$0xff] %vm561_vm2, %v408_v54 }
  0xb8   :  { %581 = vst.msk [vmem:[%s1303_s2 + $0x98] sm:$0xff] %vm561_vm2, %v448_v55 }
  0xbc   :  { %v488_v56 = vpop.f32.mrf.mxu2  ;;  %v528_v57 = vpop.f32.mrf.mxu3 }
  0xbd   :  { %597 = vst.msk [vmem:[%s1303_s2 + $0x118] sm:$0xff] %vm561_vm2, %v488_v56  ;;  %v411_v58 = vpop.f32.mrf.mxu0  ;;  %v451_v59 = vpop.f32.mrf.mxu1 }
  0xbe   :  { %613 = vst.msk [vmem:[%s1303_s2 + $0x198] sm:$0xff] %vm561_vm2, %v528_v57 }
  0xbf   :  { %566 = vst.msk [vmem:[%s1303_s2 + $0x20] sm:$0xff] %vm561_vm2, %v411_v58 }
  0xc0   :  { %582 = vst.msk [vmem:[%s1303_s2 + $0xa0] sm:$0xff] %vm561_vm2, %v451_v59 }
  0xc4   :  { %v491_v60 = vpop.f32.mrf.mxu2  ;;  %v531_v61 = vpop.f32.mrf.mxu3 }
  0xc5   :  { %598 = vst.msk [vmem:[%s1303_s2 + $0x120] sm:$0xff] %vm561_vm2, %v491_v60  ;;  %v413_v62 = vpop.f32.mrf.mxu0  ;;  %v453_v63 = vpop.f32.mrf.mxu1 }
  0xc6   :  { %614 = vst.msk [vmem:[%s1303_s2 + $0x1a0] sm:$0xff] %vm561_vm2, %v531_v61 }
  0xc7   :  { %567 = vst.msk [vmem:[%s1303_s2 + $0x28] sm:$0xff] %vm561_vm2, %v413_v62 }
  0xc8   :  { %583 = vst.msk [vmem:[%s1303_s2 + $0xa8] sm:$0xff] %vm561_vm2, %v453_v63 }
  0xcc   :  { %v493_v0 = vpop.f32.mrf.mxu2  ;;  %v533_v1 = vpop.f32.mrf.mxu3 }
  0xcd   :  { %599 = vst.msk [vmem:[%s1303_s2 + $0x128] sm:$0xff] %vm561_vm2, %v493_v0  ;;  %v416_v2 = vpop.f32.mrf.mxu0  ;;  %v456_v3 = vpop.f32.mrf.mxu1 }
  0xce   :  { %615 = vst.msk [vmem:[%s1303_s2 + $0x1a8] sm:$0xff] %vm561_vm2, %v533_v1 }
  0xcf   :  { %568 = vst.msk [vmem:[%s1303_s2 + $0x30] sm:$0xff] %vm561_vm2, %v416_v2 }
  0xd0   :  { %584 = vst.msk [vmem:[%s1303_s2 + $0xb0] sm:$0xff] %vm561_vm2, %v456_v3 }
  0xd4   :  { %v496_v4 = vpop.f32.mrf.mxu2  ;;  %v536_v5 = vpop.f32.mrf.mxu3 }
  0xd5   :  { %600 = vst.msk [vmem:[%s1303_s2 + $0x130] sm:$0xff] %vm561_vm2, %v496_v4  ;;  %v418_v6 = vpop.f32.mrf.mxu0  ;;  %v458_v7 = vpop.f32.mrf.mxu1 }
  0xd6   :  { %616 = vst.msk [vmem:[%s1303_s2 + $0x1b0] sm:$0xff] %vm561_vm2, %v536_v5 }
  0xd7   :  { %569 = vst.msk [vmem:[%s1303_s2 + $0x38] sm:$0xff] %vm561_vm2, %v418_v6 }
  0xd8   :  { %585 = vst.msk [vmem:[%s1303_s2 + $0xb8] sm:$0xff] %vm561_vm2, %v458_v7 }
  0xdc   :  { %v498_v8 = vpop.f32.mrf.mxu2  ;;  %v538_v9 = vpop.f32.mrf.mxu3 }
  0xdd   :  { %601 = vst.msk [vmem:[%s1303_s2 + $0x138] sm:$0xff] %vm561_vm2, %v498_v8  ;;  %v421_v10 = vpop.f32.mrf.mxu0  ;;  %v461_v11 = vpop.f32.mrf.mxu1 }
  0xde   :  { %617 = vst.msk [vmem:[%s1303_s2 + $0x1b8] sm:$0xff] %vm561_vm2, %v538_v9 }
  0xdf   :  { %570 = vst.msk [vmem:[%s1303_s2 + $0x40] sm:$0xff] %vm561_vm2, %v421_v10 }
  0xe0   :  { %586 = vst.msk [vmem:[%s1303_s2 + $0xc0] sm:$0xff] %vm561_vm2, %v461_v11 }
  0xe4   :  { %v501_v12 = vpop.f32.mrf.mxu2  ;;  %v541_v13 = vpop.f32.mrf.mxu3 }
  0xe5   :  { %602 = vst.msk [vmem:[%s1303_s2 + $0x140] sm:$0xff] %vm561_vm2, %v501_v12  ;;  %v423_v14 = vpop.f32.mrf.mxu0  ;;  %v463_v15 = vpop.f32.mrf.mxu1 }
  0xe6   :  { %618 = vst.msk [vmem:[%s1303_s2 + $0x1c0] sm:$0xff] %vm561_vm2, %v541_v13 }
  0xe7   :  { %571 = vst.msk [vmem:[%s1303_s2 + $0x48] sm:$0xff] %vm561_vm2, %v423_v14 }
  0xe8   :  { %587 = vst.msk [vmem:[%s1303_s2 + $0xc8] sm:$0xff] %vm561_vm2, %v463_v15 }
  0xec   :  { %v503_v16 = vpop.f32.mrf.mxu2  ;;  %v543_v17 = vpop.f32.mrf.mxu3 }
  0xed   :  { %603 = vst.msk [vmem:[%s1303_s2 + $0x148] sm:$0xff] %vm561_vm2, %v503_v16  ;;  %v426_v18 = vpop.f32.mrf.mxu0  ;;  %v466_v19 = vpop.f32.mrf.mxu1 }
  0xee   :  { %619 = vst.msk [vmem:[%s1303_s2 + $0x1c8] sm:$0xff] %vm561_vm2, %v543_v17 }
  0xef   :  { %572 = vst.msk [vmem:[%s1303_s2 + $0x50] sm:$0xff] %vm561_vm2, %v426_v18 }
  0xf0   :  { %588 = vst.msk [vmem:[%s1303_s2 + $0xd0] sm:$0xff] %vm561_vm2, %v466_v19 }
  0xf4   :  { %v506_v20 = vpop.f32.mrf.mxu2  ;;  %v546_v21 = vpop.f32.mrf.mxu3 }
  0xf5   :  { %604 = vst.msk [vmem:[%s1303_s2 + $0x150] sm:$0xff] %vm561_vm2, %v506_v20  ;;  %v428_v22 = vpop.f32.mrf.mxu0  ;;  %v468_v23 = vpop.f32.mrf.mxu1 }
  0xf6   :  { %620 = vst.msk [vmem:[%s1303_s2 + $0x1d0] sm:$0xff] %vm561_vm2, %v546_v21 }
  0xf7   :  { %573 = vst.msk [vmem:[%s1303_s2 + $0x58] sm:$0xff] %vm561_vm2, %v428_v22 }
  0xf8   :  { %589 = vst.msk [vmem:[%s1303_s2 + $0xd8] sm:$0xff] %vm561_vm2, %v468_v23 }
  0xfc   :  { %v508_v24 = vpop.f32.mrf.mxu2  ;;  %v548_v25 = vpop.f32.mrf.mxu3 }
  0xfd   :  { %605 = vst.msk [vmem:[%s1303_s2 + $0x158] sm:$0xff] %vm561_vm2, %v508_v24  ;;  %v431_v26 = vpop.f32.mrf.mxu0  ;;  %v471_v27 = vpop.f32.mrf.mxu1 }
  0xfe   :  { %621 = vst.msk [vmem:[%s1303_s2 + $0x1d8] sm:$0xff] %vm561_vm2, %v548_v25 }
  0xff   :  { %574 = vst.msk [vmem:[%s1303_s2 + $0x60] sm:$0xff] %vm561_vm2, %v431_v26 }
 0x100   :  { %590 = vst.msk [vmem:[%s1303_s2 + $0xe0] sm:$0xff] %vm561_vm2, %v471_v27 }
 0x104   :  { %v511_v28 = vpop.f32.mrf.mxu2  ;;  %v551_v29 = vpop.f32.mrf.mxu3 }
 0x105   :  { %606 = vst.msk [vmem:[%s1303_s2 + $0x160] sm:$0xff] %vm561_vm2, %v511_v28  ;;  %v433_v30 = vpop.f32.mrf.mxu0  ;;  %v473_v31 = vpop.f32.mrf.mxu1 }
 0x106   :  { %622 = vst.msk [vmem:[%s1303_s2 + $0x1e0] sm:$0xff] %vm561_vm2, %v551_v29 }
 0x107   :  { %575 = vst.msk [vmem:[%s1303_s2 + $0x68] sm:$0xff] %vm561_vm2, %v433_v30 }
 0x108   :  { %591 = vst.msk [vmem:[%s1303_s2 + $0xe8] sm:$0xff] %vm561_vm2, %v473_v31 }
 0x10c   :  { %v513_v32 = vpop.f32.mrf.mxu2  ;;  %v553_v33 = vpop.f32.mrf.mxu3 }
 0x10d   :  { %607 = vst.msk [vmem:[%s1303_s2 + $0x168] sm:$0xff] %vm561_vm2, %v513_v32  ;;  %v436_v34 = vpop.f32.mrf.mxu0  ;;  %v476_v35 = vpop.f32.mrf.mxu1 }
 0x10e   :  { %623 = vst.msk [vmem:[%s1303_s2 + $0x1e8] sm:$0xff] %vm561_vm2, %v553_v33 }
 0x10f   :  { %576 = vst.msk [vmem:[%s1303_s2 + $0x70] sm:$0xff] %vm561_vm2, %v436_v34 }
 0x110   :  { %592 = vst.msk [vmem:[%s1303_s2 + $0xf0] sm:$0xff] %vm561_vm2, %v476_v35 }
 0x114   :  { %v516_v36 = vpop.f32.mrf.mxu2  ;;  %v556_v37 = vpop.f32.mrf.mxu3 }
 0x115   :  { %608 = vst.msk [vmem:[%s1303_s2 + $0x170] sm:$0xff] %vm561_vm2, %v516_v36  ;;  %v438_v38 = vpop.f32.mrf.mxu0  ;;  %v478_v39 = vpop.f32.mrf.mxu1 }
 0x116   :  { %624 = vst.msk [vmem:[%s1303_s2 + $0x1f0] sm:$0xff] %vm561_vm2, %v556_v37 }
 0x117   :  { %577 = vst.msk [vmem:[%s1303_s2 + $0x78] sm:$0xff] %vm561_vm2, %v438_v38 }
 0x118   :  { %593 = vst.msk [vmem:[%s1303_s2 + $0xf8] sm:$0xff] %vm561_vm2, %v478_v39 }
 0x11c   :  { %v518_v40 = vpop.f32.mrf.mxu2  ;;  %v558_v41 = vpop.f32.mrf.mxu3 }
 0x11d   :  { %609 = vst.msk [vmem:[%s1303_s2 + $0x178] sm:$0xff] %vm561_vm2, %v518_v40 }
 0x11e   :  { %625 = vst.msk [vmem:[%s1303_s2 + $0x1f8] sm:$0xff] %vm561_vm2, %v558_v41 }

</bundles_post_ra>
